<compile_context>
chip_gen: v5e
topology: v5e:2x2
jax: 0.10.0
libtpu: 0.0.40
codegen_flags: <defaults>
</compile_context>

<pallas_src>
import functools

import jax
import jax.numpy as jnp
from jax.experimental import pallas as pl
from jax.experimental.pallas import tpu as pltpu


def _round_up(x, m):
    return ((x + m - 1) // m) * m


def _vmem_budget_bytes():
    """(working-set budget, vmem_limit_bytes) based on the TPU generation."""
    try:
        cap = int(pltpu.get_tpu_info().vmem_capacity_bytes)
    except Exception:  # noqa: BLE001 - fall back to the most conservative chip
        cap = 64 * 1024 * 1024
    if cap >= 128 * 1024 * 1024:          # v5e / v6e
        return 80 * 1024 * 1024, 96 * 1024 * 1024
    return 36 * 1024 * 1024, 48 * 1024 * 1024   # v7x (64 MiB per TC)


def _choose_tiles(m, k, cf, cout_pad, ws_budget):
    """Pick (ct clusters per grid block, chk clusters per inner chunk)."""
    # Inner chunk: keep the transient f32 y chunk around ~1 MiB.
    chk = max(16, ((2048 // max(k, 1)) // 16) * 16)
    # Outer block: >= ~2 MiB of HBM traffic per grid step (feat read + sel
    # write, both bf16) to amortize the ~0.35 us per-step overhead.
    bytes_per_cluster = k * cf * 2 + cout_pad * 2
    ct = _round_up(max(16, (2 << 20) // max(bytes_per_cluster, 1)), 16)
    # VMEM budget: double-buffered feat + sel blocks + W + chunk scratch.
    vmem_per_cluster = 2 * (k * cf * 2) + 2 * (cout_pad * 2)
    chunk_scratch = 2 * (chk * k * cout_pad * 4) + (1 << 20)
    headroom = ws_budget - chunk_scratch - 4 * cf * cout_pad * 2
    ct_cap = max(16, (headroom // max(vmem_per_cluster, 1)) // 16 * 16)
    ct = min(ct, ct_cap)
    # Keep >= 2 grid blocks when possible so both v7x TensorCores get work.
    ct = min(ct, max(16, _round_up((m + 1) // 2, 16)))
    chk = min(chk, ct)
    ct = max(chk, (ct // chk) * chk)       # chk must divide ct exactly
    return ct, chk


# ----------------------------- Pallas kernel -------------------------------

def _linear_scattermax_stats_kernel(feat_ref, w_ref, gamma_ref,
                                    sel_ref, stats_ref, *, k, chk):
    """One grid block = `ct` clusters (ct*k feature rows).

    y = feat @ W (bf16 operands, f32 accumulation), processed in row chunks so
    the f32 y never exceeds ~1 MiB.  The scatter_max is fused here: because
    sign(bn_scale) == sign(gamma), the post-BN/ReLU cluster max equals
    relu(scale*max_y + shift) for gamma >= 0 and relu(scale*min_y + shift) for
    gamma < 0, so a single per-cluster `sel` (max or min of y, per channel) is
    emitted in bf16, plus this block's partial sum / sum-of-squares for the BN
    batch statistics (sum -> sublanes 0-3, sumsq -> sublanes 4-7).
    """
    ct, cout = sel_ref.shape
    n_chunks = ct // chk
    rows = chk * k
    w = w_ref[...]
    g = gamma_ref[...]                                        # (1, cout) f32

    def body(c, carry):
        s, ss = carry
        r0 = pl.multiple_of(c * rows, rows)
        y = jnp.dot(feat_ref[pl.ds(r0, rows), :], w,
                    preferred_element_type=jnp.float32)       # (chk*k, cout)
        y3 = y.reshape(chk, k, cout)
        sel = jnp.where(g >= 0.0, jnp.max(y3, axis=1), jnp.min(y3, axis=1))
        sel_ref[pl.ds(pl.multiple_of(c * chk, chk), chk), :] = (
            sel.astype(sel_ref.dtype))
        return (s + jnp.sum(y, axis=0, keepdims=True),
                ss + jnp.sum(y * y, axis=0, keepdims=True))

    zero = jnp.zeros((1, cout), jnp.float32)
    s, ss = jax.lax.fori_loop(0, n_chunks, body, (zero, zero),
                              unroll=n_chunks <= 4)
    stats_ref[...] = jnp.concatenate(
        [jnp.broadcast_to(s, (4, cout)), jnp.broadcast_to(ss, (4, cout))],
        axis=0).reshape(1, 8, cout)


def mlp_and_scatter_max(feat, w, gamma, beta, m, k, eps=1e-5):
    """feat: [M*k, 3+Cin] -> [M, Cout] == scatter_max(relu(bn(feat @ w)))."""
    n_rows, cf = feat.shape
    cout = w.shape[1]
    assert n_rows == m * k

    # Lane-dense N only: pad Cout to a multiple of 128.  The contraction dim
    # Cf stays at its natural width (full-extent block) so the dominant feat
    # read is not inflated.
    cout_pad = _round_up(cout, 128)
    w_p = jnp.pad(w, ((0, 0), (0, cout_pad - cout))).astype(jnp.bfloat16)
    gamma_row = jnp.pad(gamma, (0, cout_pad - cout)).reshape(1, cout_pad)
    gamma_row = gamma_row.astype(jnp.float32)

    ws_budget, vmem_limit = _vmem_budget_bytes()
    ct, chk = _choose_tiles(m, k, cf, cout_pad, ws_budget)
    m_pad = _round_up(m, ct)
    nblk = m_pad // ct

    feat_p = feat.astype(jnp.bfloat16)
    if m_pad > m:
        # Zero rows contribute 0 to sum/sumsq; their clusters are sliced off.
        feat_p = jnp.pad(feat_p, ((0, (m_pad - m) * k), (0, 0)))

    kern = functools.partial(_linear_scattermax_stats_kernel, k=k, chk=chk)
    sel, stats = pl.pallas_call(
        kern,
        out_shape=(
            jax.ShapeDtypeStruct((m_pad, cout_pad), jnp.bfloat16),
            jax.ShapeDtypeStruct((nblk, 8, cout_pad), jnp.float32),
        ),
        grid=(nblk,),
        in_specs=[
            pl.BlockSpec((ct * k, cf), lambda i: (i, 0)),
            pl.BlockSpec((cf, cout_pad), lambda i: (0, 0)),
            pl.BlockSpec((1, cout_pad), lambda i: (0, 0)),
        ],
        out_specs=(
            pl.BlockSpec((ct, cout_pad), lambda i: (i, 0)),
            pl.BlockSpec((1, 8, cout_pad), lambda i: (i, 0, 0)),
        ),
        compiler_params=pltpu.CompilerParams(
            dimension_semantics=("parallel",),
            vmem_limit_bytes=vmem_limit),
    )(feat_p, w_p, gamma_row)

    # BatchNorm1d training-mode batch statistics (biased variance) from the
    # packed per-block partials; tiny glue in plain JAX.
    n_f = jnp.float32(n_rows)
    total_sum = jnp.sum(stats[:, 0, :cout], axis=0)
    total_sumsq = jnp.sum(stats[:, 4, :cout], axis=0)
    mean = total_sum / n_f
    var = jnp.maximum(total_sumsq / n_f - mean * mean, 0.0)  # f32 cancellation
    scale = gamma / jnp.sqrt(var + eps)
    shift = beta - mean * scale

    # Epilogue: trivial per-element affine + ReLU on an [M, Cout] slab; XLA
    # fuses it with the un-pad slice, so a second pallas_call would only add
    # launch + copy overhead (per review).
    return jnp.maximum(sel[:m, :cout].astype(jnp.float32) * scale + shift, 0.0)


# ------------------------------- JAX glue -----------------------------------
# TODO(synk): FPS / kNN neighbor *selection* is data-dependent index logic with
# no clean rectangular-BlockSpec Pallas equivalent; it stays in plain JAX and
# only the gathered dense features enter the Pallas hot path.  For large point
# clouds this glue can dominate wall-clock -- profile before tuning further.

def _fps_one_batch(pos_b, num_samples):
    """Furthest point sampling over one batch, deterministic start at point 0."""
    nb = pos_b.shape[0]

    def body(i, state):
        sel, dists = state
        last = pos_b[sel[i - 1]]
        d = jnp.sum((pos_b - last[None, :]) ** 2, axis=-1)
        dists = jnp.minimum(dists, d)
        nxt = jnp.argmax(dists).astype(jnp.int32)
        return sel.at[i].set(nxt), dists

    sel0 = jnp.zeros((num_samples,), dtype=jnp.int32)
    dists0 = jnp.full((nb,), jnp.inf, dtype=jnp.float32)
    sel, _ = jax.lax.fori_loop(1, num_samples, body, (sel0, dists0))
    return sel


def _knn_one_batch(pos_b, centers_b, k):
    d = jnp.sum((centers_b[:, None, :] - pos_b[None, :, :]) ** 2, axis=-1)
    _, idx = jax.lax.top_k(-d, k)
    return idx.astype(jnp.int32)  # [Mb, k]


def transition_down_forward(x, pos, batch, params, ratio=0.25, k=16):
    """Mirrors TransitionDown.forward.

    Assumes `batch` is contiguous with equal-sized batches (standard PyG setup).
    Returns (out [M, Cout], sub_pos [M, 3], sub_batch [M]).
    """
    n, cin = x.shape
    b = int(batch[-1]) + 1
    nb = n // b
    mb = int(nb * ratio)
    m = b * mb

    pos_r = pos.reshape(b, nb, 3)

    # --- fps ---
    local_sel = jax.vmap(lambda p: _fps_one_batch(p, mb))(pos_r)        # [B, Mb]
    offsets = (jnp.arange(b, dtype=jnp.int32) * nb)[:, None]
    id_clusters = (local_sel + offsets).reshape(-1)                      # [M]
    sub_batch = batch[id_clusters]
    sub_pos = pos[id_clusters]                                           # [M, 3]

    # --- knn (within same batch) ---
    centers = jax.vmap(lambda p, s: p[s])(pos_r, local_sel)             # [B, Mb, 3]
    nbr_local = jax.vmap(_knn_one_batch, in_axes=(0, 0, None))(pos_r, centers, k)
    nbr = (nbr_local + offsets[:, :, None]).reshape(m, k)               # [M, k]

    # --- gather + concat: emit the kernel-ready bf16 feat layout directly ---
    rel_pos = (pos[nbr] - sub_pos[:, None, :]).astype(jnp.bfloat16)     # [M, k, 3]
    feat = jnp.concatenate([rel_pos, x.astype(jnp.bfloat16)[nbr]], axis=-1)
    feat = feat.reshape(m * k, 3 + cin)                                  # bf16

    # --- MLP (Linear -> BN -> ReLU) + scatter_max, fused Pallas hot path ---
    out = mlp_and_scatter_max(feat, params["w"], params["gamma"],
                              params["beta"], m, k)
    return out, sub_pos, sub_batch


# ------------------------------- example ------------------------------------

def _init_params(key, in_channels, out_channels):
    cf = 3 + in_channels
    bound = 1.0 / jnp.sqrt(cf)
    w = jax.random.uniform(key, (cf, out_channels), jnp.float32, -bound, bound)
    gamma = jnp.ones((out_channels,), jnp.float32)
    beta = jnp.zeros((out_channels,), jnp.float32)
    return {"w": w, "gamma": gamma, "beta": beta}


def _ref_mlp_scatter_max(feat, w, gamma, beta, m, k, eps=1e-5):
    lin = feat @ w
    mu = lin.mean(axis=0)
    va = lin.var(axis=0)
    y = jnp.maximum((lin - mu) / jnp.sqrt(va + eps) * gamma + beta, 0.0)
    return jnp.max(y.reshape(m, k, -1), axis=1)


if __name__ == "__main__":
    key = jax.random.PRNGKey(0)
    k_pos, k_x, k_w, k_chk = jax.random.split(key, 4)

    B, NB = 2, 64                  # 2 batches, 64 points each -> N = 128
    N = B * NB
    IN_CH, OUT_CH = 4, 32
    RATIO, K = 0.25, 8             # -> 16 clusters per batch, 32 total

    pos = jax.random.normal(k_pos, (N, 3), jnp.float32)
    x = jax.random.normal(k_x, (N, IN_CH), jnp.float32)
    batch = jnp.repeat(jnp.arange(B, dtype=jnp.int32), NB)

    params = _init_params(k_w, IN_CH, OUT_CH)

    out, sub_pos, sub_batch = transition_down_forward(
        x, pos, batch, params, ratio=RATIO, k=K)
    jax.block_until_ready((out, sub_pos, sub_batch))

    assert out.shape == (int(N * RATIO), OUT_CH)
    assert sub_pos.shape == (int(N * RATIO), 3)
    assert sub_batch.shape == (int(N * RATIO),)

    # Check the fused Pallas hot path vs a pure-JAX f32 reference (loose
    # tolerance: kernel uses bf16 operands / bf16 sel intermediate).
    m_t, k_t = 32, 8
    feat_t = jax.random.normal(k_chk, (m_t * k_t, 3 + IN_CH), jnp.float32)

    # 1) default gamma (all positive -> cluster max path)
    got = mlp_and_scatter_max(feat_t, params["w"], params["gamma"],
                              params["beta"], m_t, k_t)
    ref = _ref_mlp_scatter_max(feat_t, params["w"], params["gamma"],
                               params["beta"], m_t, k_t)
    assert jnp.allclose(got, ref, rtol=0.1, atol=0.1)

    # 2) mixed-sign gamma -> exercises the sign(gamma) min-branch selection
    signs = jnp.where(jnp.arange(OUT_CH) % 2 == 0, 1.5, -0.75).astype(jnp.float32)
    beta2 = jnp.full((OUT_CH,), 0.3, jnp.float32)
    got2 = mlp_and_scatter_max(feat_t, params["w"], signs, beta2, m_t, k_t)
    ref2 = _ref_mlp_scatter_max(feat_t, params["w"], signs, beta2, m_t, k_t)
    assert jnp.allclose(got2, ref2, rtol=0.1, atol=0.1)

    print("KERNEL_OK")
</pallas_src>

<mosaic_0001>
module attributes {stable_mosaic.version = 11 : i64} {
  func.func @_linear_scattermax_stats_kernel(%arg0: i32, %arg1: memref<128x7xbf16, #tpu.memory_space<vmem>>, %arg2: memref<7x128xbf16, #tpu.memory_space<vmem>>, %arg3: memref<1x128xf32, #tpu.memory_space<vmem>>, %arg4: memref<16x128xbf16, #tpu.memory_space<vmem>>, %arg5: memref<1x8x128xf32, #tpu.memory_space<vmem>>) attributes {dimension_semantics = [#tpu.dimension_semantics<parallel>], iteration_bounds = array<i64: 2>, scalar_prefetch = 0 : i64, scratch_operands = 0 : i64, tpu.core_type = #tpu.core_type<tc>, window_params = [{transform_indices = @transform_0, window_bounds = array<i64: 128, 7>}, {pipeline_mode = #tpu.pipeline_mode<synchronous>, transform_indices = @transform_1, window_bounds = array<i64: 7, 128>}, {pipeline_mode = #tpu.pipeline_mode<synchronous>, transform_indices = @transform_2, window_bounds = array<i64: 1, 128>}, {transform_indices = @transform_3, window_bounds = array<i64: 16, 128>}, {transform_indices = @transform_4, window_bounds = array<i64: 1, 8, 128>}]} {
    %c0 = arith.constant 0 : index
    %c0_0 = arith.constant 0 : index
    %0 = vector.load %arg2[%c0, %c0_0] : memref<7x128xbf16, #tpu.memory_space<vmem>>, vector<7x128xbf16>
    %c0_1 = arith.constant 0 : index
    %c0_2 = arith.constant 0 : index
    %1 = vector.load %arg3[%c0_1, %c0_2] : memref<1x128xf32, #tpu.memory_space<vmem>>, vector<1x128xf32>
    %cst = arith.constant 0.000000e+00 : f32
    %2 = vector.broadcast %cst : f32 to vector<1x128xf32>
    %c0_i32 = arith.constant 0 : i32
    %c128_i32 = arith.constant 128 : i32
    %3 = arith.muli %c0_i32, %c128_i32 : i32
    %4 = tpu.assume_multiple %3, 128 : i32
    %5 = arith.index_cast %4 : i32 to index
    %c0_3 = arith.constant 0 : index
    %6 = vector.load %arg1[%5, %c0_3] : memref<128x7xbf16, #tpu.memory_space<vmem>>, vector<128x7xbf16>
    %cst_4 = arith.constant dense<0.000000e+00> : vector<128x128xf32>
    %7 = tpu.matmul %6, %0, %cst_4 {dimension_numbers = #tpu.dot_dimension_numbers<[1], [0], [0], [1], [0, 0, 1, 1], [], []>} : vector<128x7xbf16>, vector<7x128xbf16>, vector<128x128xf32> -> vector<128x128xf32>
    %8 = vector.shape_cast %7 : vector<128x128xf32> to vector<16x8x128xf32>
    %cst_5 = arith.constant 0.000000e+00 : f32
    %9 = vector.broadcast %cst_5 : f32 to vector<1x128xf32>
    %10 = arith.cmpf oge, %1, %9 : vector<1x128xf32>
    %cst_6 = arith.constant dense<0xFF800000> : vector<16x128xf32>
    %11 = vector.multi_reduction <maximumf>, %8, %cst_6 [1] : vector<16x8x128xf32> to vector<16x128xf32>
    %cst_7 = arith.constant dense<0x7F800000> : vector<16x128xf32>
    %12 = vector.multi_reduction <minimumf>, %8, %cst_7 [1] : vector<16x8x128xf32> to vector<16x128xf32>
    %13 = vector.shape_cast %10 : vector<1x128xi1> to vector<1x128xi1>
    %14 = vector.broadcast %13 : vector<1x128xi1> to vector<16x128xi1>
    %15 = arith.select %14, %11, %12 : vector<16x128xi1>, vector<16x128xf32>
    %16 = arith.truncf %15 : vector<16x128xf32> to vector<16x128xbf16>
    %c16_i32 = arith.constant 16 : i32
    %17 = arith.muli %c0_i32, %c16_i32 : i32
    %18 = tpu.assume_multiple %17, 16 : i32
    %19 = arith.index_cast %18 : i32 to index
    %c0_8 = arith.constant 0 : index
    %20 = vector.load %arg4[%19, %c0_8] : memref<16x128xbf16, #tpu.memory_space<vmem>>, vector<16x128xbf16>
    tpu.vector_store %arg4[%19, %c0_8], %16 {strides = array<i32>} : memref<16x128xbf16, #tpu.memory_space<vmem>>, vector<16x128xbf16>,
    %cst_9 = arith.constant dense<0.000000e+00> : vector<128xf32>
    %21 = vector.multi_reduction <add>, %7, %cst_9 [0] : vector<128x128xf32> to vector<128xf32>
    %22 = vector.shape_cast %21 : vector<128xf32> to vector<1x128xf32>
    %23 = arith.addf %2, %22 : vector<1x128xf32>
    %24 = arith.mulf %7, %7 : vector<128x128xf32>
    %cst_10 = arith.constant dense<0.000000e+00> : vector<128xf32>
    %25 = vector.multi_reduction <add>, %24, %cst_10 [0] : vector<128x128xf32> to vector<128xf32>
    %26 = vector.shape_cast %25 : vector<128xf32> to vector<1x128xf32>
    %27 = arith.addf %2, %26 : vector<1x128xf32>
    %c1_i32 = arith.constant 1 : i32
    %28 = vector.shape_cast %23 : vector<1x128xf32> to vector<1x128xf32>
    %29 = vector.broadcast %28 : vector<1x128xf32> to vector<4x128xf32>
    %30 = vector.shape_cast %27 : vector<1x128xf32> to vector<1x128xf32>
    %31 = vector.broadcast %30 : vector<1x128xf32> to vector<4x128xf32>
    %32 = tpu.concatenate %29, %31 in 0 : vector<4x128xf32>, vector<4x128xf32> -> vector<8x128xf32>
    %33 = vector.shape_cast %32 : vector<8x128xf32> to vector<1x8x128xf32>
    %c0_11 = arith.constant 0 : index
    %c0_12 = arith.constant 0 : index
    %c0_13 = arith.constant 0 : index
    %34 = vector.load %arg5[%c0_11, %c0_12, %c0_13] : memref<1x8x128xf32, #tpu.memory_space<vmem>>, vector<1x8x128xf32>
    tpu.vector_store %arg5[%c0_11, %c0_12, %c0_13], %33 {strides = array<i32>} : memref<1x8x128xf32, #tpu.memory_space<vmem>>, vector<1x8x128xf32>,
    return
  }
  func.func @transform_0(%arg0: i32) -> (i32, i32) {
    %c0_i32 = arith.constant 0 : i32
    %c0_i32_0 = arith.constant 0 : i32
    return %arg0, %c0_i32 : i32, i32
  }
  func.func @transform_1(%arg0: i32) -> (i32, i32) {
    %c0_i32 = arith.constant 0 : i32
    %c0_i32_0 = arith.constant 0 : i32
    %c0_i32_1 = arith.constant 0 : i32
    return %c0_i32, %c0_i32_0 : i32, i32
  }
  func.func @transform_2(%arg0: i32) -> (i32, i32) {
    %c0_i32 = arith.constant 0 : i32
    %c0_i32_0 = arith.constant 0 : i32
    %c0_i32_1 = arith.constant 0 : i32
    return %c0_i32, %c0_i32_0 : i32, i32
  }
  func.func @transform_3(%arg0: i32) -> (i32, i32) {
    %c0_i32 = arith.constant 0 : i32
    %c0_i32_0 = arith.constant 0 : i32
    return %arg0, %c0_i32 : i32, i32
  }
  func.func @transform_4(%arg0: i32) -> (i32, i32, i32) {
    %c0_i32 = arith.constant 0 : i32
    %c0_i32_0 = arith.constant 0 : i32
    %c0_i32_1 = arith.constant 0 : i32
    return %arg0, %c0_i32, %c0_i32_0 : i32, i32, i32
  }
}

</mosaic_0001>

<bundles_post_ra>
// kernel: tpu_custom_call.1
= control target key start
LH: loop header
LB: loop body
LE: loop exit
PB: predicated region body
PF: predicated region fallthrough
CT: control target
= control target key end

     0   :  { %10 = vsyncpa [#allocation3], 0  ;;  %s1392_s0 = inlined_call_operand.vmem [shape: bf16[256,7], index: 0, kind: input, shape index: {}]   ;;  %s1393_s1 = inlined_call_operand.vmem [shape: bf16[7,128], index: 1, kind: input, shape index: {}]   ;;  %s1394_s2 = inlined_call_operand.vmem [shape: f32[1,128], index: 2, kind: input, shape index: {}]   ;;  %s1395_s3 = inlined_call_operand.hbm [shape: bf16[32,128], index: 3, kind: output, shape index: {0}]   ;;  %s1396_s4 = inlined_call_operand.hbm [shape: f32[2,8,128], index: 4, kind: output, shape index: {1}]  }
   0x1   :  { %12 = vsyncpa [#allocation3 + $0x1], 0 }
   0x2   :  { %13 = vsyncpa [#allocation5], 0 }
   0x3   :  { %15 = vsyncpa [#allocation5 + $0x1], 0  ;;  %s1060_s15 = smov 0   ;;  %s1062_s16 = smov 0  }
   0x4   :  { %s1064_s17 = smov 0   ;;  %s1066_s18 = smov 0  }
   0x5 LB: > { %s1081_s19 = sadd.s32 4294967295, %s1029_s18   ;;  %s815_s20 = sadd.s32 4294967294, %s1029_s18   ;;  %s1029_s18 = sphi %s1066_s18, %s1404_s18   ;;  %s1025_s17 = sphi %s1064_s17, %s1403_s17   ;;  %s1021_s16 = sphi %s1062_s16, %s1402_s16   ;;  %s1017_s15 = sphi %s1060_s15, %s1401_s15  }
   0x6   : > { %s1085_s21 = sadd.s32 1, %s1029_s18   ;;  %s96_s22 = sadd.s32 1, %s1025_s17 }
   0x7   : > { %s93_s23 = ssub.s32 %s1029_s18, %s1085_s21  ;;  %p106_p0 = scmp.ne.s32.totalorder %s1025_s17, %s1021_s16 }
   0x8   : > { %p94_p1 = scmp.eq.s32.totalorder %s93_s23, 0  ;;  %p107_p2 = scmp.eq.s32.totalorder %s1081_s19, 1 }
   0x9   : > { %p112_p3 = scmp.ne.s32.totalorder %s1021_s16, %s1017_s15  ;;  %p113_p4 = scmp.eq.s32.totalorder %s815_s20, 1 }
   0xa   : > { %s1096_s24 = scalar_select %p94_p1, %s1025_s17, %s96_s22  }
   0xb   : > { %p1098_p5 = por %p107_p2, %p106_p0  ;;  %p1102_p6 = por %p113_p4, %p112_p3 }
   0xc   : > { %p818_p7 = scmp.ge.s32.totalorder %s1029_s18, 1  ;;  %p172_p8 = scmp.lt.s32.totalorder %s1029_s18, 3 }
   0xe   : > { %p173_p9 = pnand %p818_p7, %p172_p8 }
   0xf   : > { %s821_s29 = sshll.u32 (!%p173_p9), %s1081_s19, 4  ;;  %s1295_s10 = sand.u32 (!%p173_p9), 1, %s1021_s16  }
  0x10   : > { %176 = sbr.rel (%p173_p9) target bundleno = 245 (0xf5), region = 32  ;;  %p204_p10 = scmp.lt.s32.totalorder (!%p173_p9), %s821_s29, 31 }
  0x11   : > { %s878_s11 = sshll.u32 (!%p173_p9), %s1081_s19, 3  ;;  %s819_s12 = sshll.u32 (!%p173_p9), %s1295_s10, 3 }
  0x12   : > { %s702_s20 = scalar_lea.hbm (!%p173_p9), %s1395_s3, %s878_s11  ;;  %s195_s22 = scalar_lea.vmem (!%p173_p9), [#allocation2], %s819_s12 }
  0x13   : > { %s703_s23 = sshll.u32 (!%p173_p9), %s195_s22, 4  ;;  %s705_s27 = sshll.u32 (!%p173_p9), %s702_s20, 4  ;;  %s704_s23 = int_to_ptr.vmem [resolvable:$true] %s703_s23  ;;  %s706_s27 = int_to_ptr.hbm [resolvable:$true] %s705_s27 }
  0x14   : > { %s686_s5 = scalar_lea.sflag (!%p173_p9), [#allocation3], %s1295_s10  ;;  %s949_s6 = sshra.s32 (!%p173_p9), %s706_s27, 4  ;;  %s950_s6 = int_to_ptr.hbm [resolvable:$true] %s949_s6 }
  0x15   : > { %v211_v0 = vld [vmem:[%s1393_s1] sm:$0xf]  ;;  %vm294_vm0 = vcmask 1042432   ;;  %vm295_vm1 = vcmask 1043456   ;;  %v1031_v1 = vmov 65535   ;;  %s1406_s29 = smov (!%p204_p10, %s821_s29), 31  ;;  %p956_p0 = scmp.lt.s32.totalorder %s950_s6, %s1395_s3 }
  0x16   : > { %v296_v2 = vsel %vm294_vm0, 4294967295, %v1031_v1  ;;  %s822_s30 = sshll.u32 %s1406_s29, 2  ;;  %vm269_vm2 = vcmask 56320   ;;  %vm562_vm3 = vcmask 1041409   ;;  %vm564_vm4 = vcmask 1042434   ;;  %s955_s13 = scalar_lea.hbm %s1395_s3, 16 }
  0x17   : > { %v297_v3 = vsel %vm295_vm1, %v296_v2, 0  ;;  %s207_s7 = scalar_lea.vmem %s1392_s0, %s822_s30  ;;  %vm566_vm5 = vcmask 1043459   ;;  %vm568_vm6 = vcmask 1044484   ;;  %vm570_vm8 = vcmask 1045509   ;;  %s718_s30 = scalar_lea.hbm %s1396_s4, %s878_s11 }
  0x18   : > { %v299_v4 = vand.u32 %v297_v3, %v211_v0  ;;  %v870_v5 = vld [vmem:[%s207_s7] sm:$0xff]  ;;  %v872_v6 = vld [vmem:[%s207_s7 + $0x10] sm:$0xff]  ;;  %v871_v9 = vld [vmem:[%s207_s7 + $0x8] sm:$0xff]  ;;  %vm572_vm9 = vcmask 1046534   ;;  %vm574_vm10 = vcmask 1047559  }
  0x19   : > { %v874_v7 = vld [vmem:[%s207_s7 + $0x20] sm:$0xff]  ;;  %v876_v8 = vld [vmem:[%s207_s7 + $0x30] sm:$0xff]  ;;  %v873_v10 = vld [vmem:[%s207_s7 + $0x18] sm:$0xff] }
  0x1a   : > { %308 = vmatpush.bf16.msra.mxu0 %v299_v4  ;;  %884 = vmatpush.bf16.msra.mxu1 %v299_v4  ;;  %v875_v11 = vld [vmem:[%s207_s7 + $0x28] sm:$0xff]  ;;  %v877_v12 = vld [vmem:[%s207_s7 + $0x38] sm:$0xff]  ;;  %s951_s7 = scalar_lea.hbm %s950_s6, 8 }
  0x1b   : > { %885 = vmatpush.bf16.msra.mxu2 %v299_v4  ;;  %886 = vmatpush.bf16.msra.mxu3 %v299_v4  ;;  %p952_p11 = scmp.ne.s32.totalorder %s950_s6, %s951_s7  ;;  %p957_p1 = scmp.lt.s32.totalorder %s955_s13, %s951_s7 }
  0x1d   : > { %855 = vmatmul.msk.bf16.vlgmr.msra.gmra.mxu0 %vm269_vm2, %v870_v5  ;;  %857 = vmatmul.msk.bf16.vlgmr.msra.gmra.mxu1 %vm269_vm2, %v872_v6  ;;  %p953_p12 = pnand %p952_p11, %p1098_p5  ;;  %p958_p2 = por %p957_p1, %p956_p0 }
  0x1e   : > { %859 = vmatmul.msk.bf16.vlgmr.msra.gmra.mxu2 %vm269_vm2, %v874_v7  ;;  %861 = vmatmul.msk.bf16.vlgmr.msra.gmra.mxu3 %vm269_vm2, %v876_v8 }
  0x1f   : > { %p954_p13 = pneg %p953_p12 }
  0x21   : > { %p959_p3 = pnand %p958_p2, %p954_p13 }
  0x2d   : > { %856 = vmatmul.msk.bf16.gmra.mxu0 %vm269_vm2, %v871_v9  ;;  %858 = vmatmul.msk.bf16.gmra.mxu1 %vm269_vm2, %v873_v10 }
  0x2e   : > { %860 = vmatmul.msk.bf16.gmra.mxu2 %vm269_vm2, %v875_v11  ;;  %862 = vmatmul.msk.bf16.gmra.mxu3 %vm269_vm2, %v877_v12 }
  0x9a   : > { %v310_v13 = vpop.f32.mrf.mxu0  ;;  %v1124_v14 = vpop.f32.mrf.mxu1 }
  0x9b   : > { %v351_v15 = vrot.slane %v310_v13, 4  ;;  %v375_v16 = vrot.slane %v1124_v14, 4  ;;  %v645_v25 = vmul.f32 %v310_v13, %v310_v13  ;;  %v1131_v26 = vmul.f32 %v1124_v14, %v1124_v14 }
  0x9d   : > { %v352_v17 = vmax.f32 %v310_v13, %v351_v15  ;;  %v448_v18 = vmin.f32 %v310_v13, %v351_v15  ;;  %v376_v19 = vmax.f32 %v1124_v14, %v375_v16  ;;  %v472_v20 = vmin.f32 %v1124_v14, %v375_v16 }
  0x9f   : > { %v353_v21 = vrot.slane %v352_v17, 2  ;;  %v449_v22 = vrot.slane %v448_v18, 2  ;;  %v377_v23 = vrot.slane %v376_v19, 2  ;;  %v473_v24 = vrot.slane %v472_v20, 2 }
  0xa1   : > { %v354_v27 = vmax.f32 %v352_v17, %v353_v21  ;;  %v450_v28 = vmin.f32 %v448_v18, %v449_v22  ;;  %v378_v29 = vmax.f32 %v376_v19, %v377_v23  ;;  %v474_v30 = vmin.f32 %v472_v20, %v473_v24  ;;  %v1133_v31 = vpop.f32.mrf.mxu2  ;;  %v1135_v32 = vpop.f32.mrf.mxu3 }
  0xa2   : > { %v399_v33 = vrot.slane %v1133_v31, 4  ;;  %v1140_v34 = vmul.f32 %v1133_v31, %v1133_v31  ;;  %v312_v35 = vpop.f32.mrf.mxu0  ;;  %v423_v36 = vrot.slane %v1135_v32, 4  ;;  %v1145_v37 = vmul.f32 %v1135_v32, %v1135_v32  ;;  %v1151_v46 = vpop.f32.mrf.mxu1 }
  0xa3   : > { %v355_v38 = vrot.slane %v354_v27, 1  ;;  %v451_v39 = vrot.slane %v450_v28, 1  ;;  %v379_v40 = vrot.slane %v378_v29, 1  ;;  %v475_v41 = vrot.slane %v474_v30, 1 }
  0xa4   : > { %v400_v42 = vmax.f32 %v1133_v31, %v399_v33  ;;  %v496_v43 = vmin.f32 %v1133_v31, %v399_v33  ;;  %v357_v44 = vrot.slane %v312_v35, 4  ;;  %v1149_v45 = vadd.f32 %v312_v35, %v310_v13 }
  0xa5   : > { %v356_v47 = vmax.f32 %v354_v27, %v355_v38  ;;  %v452_v48 = vmin.f32 %v450_v28, %v451_v39  ;;  %v1153_v49 = vmax.f32 %v378_v29, %v379_v40  ;;  %v1155_v50 = vmin.f32 %v474_v30, %v475_v41 }
  0xa6   : > { %v401_v51 = vrot.slane %v400_v42, 2  ;;  %v497_v52 = vrot.slane %v496_v43, 2  ;;  %v358_v53 = vmax.f32 %v312_v35, %v357_v44  ;;  %v454_v54 = vmin.f32 %v312_v35, %v357_v44 }
  0xa7   : > { %v646_v55 = vmul.f32 %v312_v35, %v312_v35  ;;  %v381_v56 = vrot.slane %v1151_v46, 4  ;;  %v1160_v57 = vmul.f32 %v1151_v46, %v1151_v46  ;;  %v424_v58 = vmax.f32 %v1135_v32, %v423_v36 }
  0xa8   : > { %v402_v59 = vmax.f32 %v400_v42, %v401_v51  ;;  %v498_v60 = vmin.f32 %v496_v43, %v497_v52  ;;  %v359_v61 = vrot.slane %v358_v53, 2  ;;  %v455_v62 = vrot.slane %v454_v54, 2 }
  0xa9   : > { %v1163_v63 = vadd.f32 %v646_v55, %v645_v25  ;;  %v382_v0 = vmax.f32 %v1151_v46, %v381_v56  ;;  %v478_v1 = vmin.f32 %v1151_v46, %v381_v56  ;;  %v425_v2 = vrot.slane %v424_v58, 2  ;;  %v1168_v11 = vpop.f32.mrf.mxu2  ;;  %v1199_v52 = vpop.f32.mrf.mxu3 }
  0xaa   : > { %v403_v3 = vrot.slane %v402_v59, 1  ;;  %v499_v4 = vrot.slane %v498_v60, 1  ;;  %v360_v5 = vmax.f32 %v358_v53, %v359_v61  ;;  %v456_v6 = vmin.f32 %v454_v54, %v455_v62  ;;  %v1175_v25 = vpop.f32.mrf.mxu0  ;;  %v1192_v43 = vpop.f32.mrf.mxu1 }
  0xab   : > { %v383_v7 = vrot.slane %v382_v0, 2  ;;  %v479_v8 = vrot.slane %v478_v1, 2  ;;  %v426_v9 = vmax.f32 %v424_v58, %v425_v2  ;;  %v520_v10 = vmin.f32 %v1135_v32, %v423_v36 }
  0xac   : > { %v404_v12 = vmax.f32 %v402_v59, %v403_v3  ;;  %v500_v13 = vmin.f32 %v498_v60, %v499_v4  ;;  %v361_v15 = vrot.slane %v360_v5, 1  ;;  %v457_v16 = vrot.slane %v456_v6, 1 }
  0xad   : > { %v384_v17 = vmax.f32 %v382_v0, %v383_v7  ;;  %v480_v18 = vmin.f32 %v478_v1, %v479_v8  ;;  %v427_v19 = vrot.slane %v426_v9, 1  ;;  %v521_v20 = vrot.slane %v520_v10, 2 }
  0xae   : > { %v362_v21 = vmax.f32 %v360_v5, %v361_v15  ;;  %v458_v22 = vmin.f32 %v456_v6, %v457_v16  ;;  %v405_v23 = vrot.slane %v1168_v11, 4  ;;  %v1173_v24 = vmul.f32 %v1168_v11, %v1168_v11 }
  0xaf   : > { %v385_v27 = vrot.slane %v384_v17, 1  ;;  %v481_v28 = vrot.slane %v480_v18, 1  ;;  %v1177_v29 = vmax.f32 %v426_v9, %v427_v19  ;;  %v522_v30 = vmin.f32 %v520_v10, %v521_v20 }
  0xb0   : > { %v1180_v33 = vsel %vm562_vm3, %v362_v21, %v356_v47  ;;  %v1183_v35 = vsel %vm562_vm3, %v458_v22, %v452_v48  ;;  %v406_v36 = vmax.f32 %v1168_v11, %v405_v23  ;;  %v502_v38 = vmin.f32 %v1168_v11, %v405_v23 }
  0xb1   : > { %v1187_v39 = vmax.f32 %v384_v17, %v385_v27  ;;  %v1189_v40 = vmin.f32 %v480_v18, %v481_v28  ;;  %v523_v41 = vrot.slane %v522_v30, 1  ;;  %v363_v42 = vrot.slane %v1175_v25, 4  ;;  %v1218_v23 = vpop.f32.mrf.mxu2 }
  0xb2   : > { %v407_v44 = vrot.slane %v406_v36, 2  ;;  %v503_v51 = vrot.slane %v502_v38, 2  ;;  %v1196_v47 = vmul.f32 %v1175_v25, %v1175_v25  ;;  %v387_v48 = vrot.slane %v1192_v43, 4 }
  0xb3   : > { %v1201_v53 = vmin.f32 %v522_v30, %v523_v41  ;;  %v364_v54 = vmax.f32 %v1175_v25, %v363_v42  ;;  %v460_v55 = vmin.f32 %v1175_v25, %v363_v42  ;;  %v1207_v56 = vmul.f32 %v1192_v43, %v1192_v43 }
  0xb4   : > { %v408_v58 = vmax.f32 %v406_v36, %v407_v44  ;;  %v504_v59 = vmin.f32 %v502_v38, %v503_v51  ;;  %v388_v60 = vmax.f32 %v1192_v43, %v387_v48  ;;  %v484_v61 = vmin.f32 %v1192_v43, %v387_v48  ;;  %v317_v38 = vpop.f32.mrf.mxu0 }
  0xb5   : > { %v365_v62 = vrot.slane %v364_v54, 2  ;;  %v461_v0 = vrot.slane %v460_v55, 2  ;;  %v429_v1 = vrot.slane %v1199_v52, 4  ;;  %v1214_v2 = vmul.f32 %v1199_v52, %v1199_v52 }
  0xb6   : > { %v409_v3 = vrot.slane %v408_v58, 1  ;;  %v505_v4 = vrot.slane %v504_v59, 1  ;;  %v389_v5 = vrot.slane %v388_v60, 2  ;;  %v485_v6 = vrot.slane %v484_v61, 2 }
  0xb7   : > { %v366_v7 = vmax.f32 %v364_v54, %v365_v62  ;;  %v462_v8 = vmin.f32 %v460_v55, %v461_v0  ;;  %v430_v9 = vmax.f32 %v1199_v52, %v429_v1  ;;  %v526_v10 = vmin.f32 %v1199_v52, %v429_v1 }
  0xb8   : > { %v410_v15 = vmax.f32 %v408_v58, %v409_v3  ;;  %v506_v16 = vmin.f32 %v504_v59, %v505_v4  ;;  %v390_v17 = vmax.f32 %v388_v60, %v389_v5  ;;  %v486_v18 = vmin.f32 %v484_v61, %v485_v6  ;;  %v327_v5 = vpop.f32.mrf.mxu1 }
  0xb9   : > { %v367_v19 = vrot.slane %v366_v7, 1  ;;  %v463_v20 = vrot.slane %v462_v8, 1  ;;  %v431_v21 = vrot.slane %v430_v9, 2  ;;  %v527_v22 = vrot.slane %v526_v10, 2 }
  0xba   : > { %v1221_v27 = vsel %vm562_vm3, %v410_v15, %v404_v12  ;;  %v1224_v28 = vsel %vm562_vm3, %v506_v16, %v500_v13  ;;  %v391_v30 = vrot.slane %v390_v17, 1  ;;  %v487_v36 = vrot.slane %v486_v18, 1 }
  0xbb   : > { %v368_v41 = vmax.f32 %v366_v7, %v367_v19  ;;  %v464_v42 = vmin.f32 %v462_v8, %v463_v20  ;;  %v432_v44 = vmax.f32 %v430_v9, %v431_v21  ;;  %v528_v51 = vmin.f32 %v526_v10, %v527_v22 }
  0xbc   : > { %v1226_v48 = vmax.f32 %v390_v17, %v391_v30  ;;  %v1228_v54 = vmin.f32 %v486_v18, %v487_v36  ;;  %v411_v55 = vrot.slane %v1218_v23, 4  ;;  %v1233_v12 = vmul.f32 %v1218_v23, %v1218_v23  ;;  %v1249_v36 = vpop.f32.mrf.mxu3 }
  0xbd   : > { %v433_v58 = vrot.slane %v432_v44, 1  ;;  %v529_v13 = vrot.slane %v528_v51, 1  ;;  %v369_v59 = vrot.slane %v317_v38, 4  ;;  %v565_v62 = vsel %vm564_vm4, %v368_v41, %v1180_v33 }
  0xbe   : > { %v412_v60 = vmax.f32 %v1218_v23, %v411_v55  ;;  %v508_v61 = vmin.f32 %v1218_v23, %v411_v55  ;;  %v602_v8 = vsel %vm564_vm4, %v464_v42, %v1183_v35  ;;  %v624_v15 = vadd.f32 %v1149_v45, %v1175_v25 }
  0xbf   : > { %v1239_v0 = vmax.f32 %v432_v44, %v433_v58  ;;  %v1241_v1 = vmin.f32 %v528_v51, %v529_v13  ;;  %v370_v3 = vmax.f32 %v317_v38, %v369_v59  ;;  %v466_v4 = vmin.f32 %v317_v38, %v369_v59 }
  0xc0   : > { %v413_v6 = vrot.slane %v412_v60, 2  ;;  %v509_v7 = vrot.slane %v508_v61, 2  ;;  %v648_v33 = vmul.f32 %v317_v38, %v317_v38  ;;  %v662_v18 = vadd.f32 %v1163_v63, %v1196_v47 }
  0xc1   : > { %v371_v9 = vrot.slane %v370_v3, 2  ;;  %v467_v10 = vrot.slane %v466_v4, 2  ;;  %v393_v19 = vrot.slane %v327_v5, 4  ;;  %v625_v22 = vadd.f32 %v624_v15, %v317_v38  ;;  %v337_v15 = vpop.f32.mrf.mxu2 }
  0xc2   : > { %v414_v16 = vmax.f32 %v412_v60, %v413_v6  ;;  %v510_v17 = vmin.f32 %v508_v61, %v509_v7  ;;  %v652_v30 = vmul.f32 %v327_v5, %v327_v5  ;;  %v663_v42 = vadd.f32 %v662_v18, %v648_v33 }
  0xc3   : > { %v372_v20 = vmax.f32 %v370_v3, %v371_v9  ;;  %v468_v21 = vmin.f32 %v466_v4, %v467_v10  ;;  %v394_v44 = vmax.f32 %v327_v5, %v393_v19  ;;  %v626_v45 = vadd.f32 %v625_v22, %v1124_v14 }
  0xc4   : > { %v415_v41 = vrot.slane %v414_v16, 1  ;;  %v511_v35 = vrot.slane %v510_v17, 1  ;;  %v490_v25 = vmin.f32 %v327_v5, %v393_v19  ;;  %v664_v63 = vadd.f32 %v663_v42, %v1131_v26 }
  0xc5   : > { %v373_v51 = vrot.slane %v372_v20, 1  ;;  %v469_v55 = vrot.slane %v468_v21, 1  ;;  %v395_v47 = vrot.slane %v394_v44, 2  ;;  %v627_v61 = vadd.f32 %v626_v45, %v1151_v46 }
  0xc6   : > { %v416_v58 = vmax.f32 %v414_v16, %v415_v41  ;;  %v512_v13 = vmin.f32 %v510_v17, %v511_v35  ;;  %v491_v38 = vrot.slane %v490_v25, 2  ;;  %v665_v4 = vadd.f32 %v664_v63, %v1160_v57 }
  0xc7   : > { %v374_v59 = vmax.f32 %v372_v20, %v373_v51  ;;  %v470_v60 = vmin.f32 %v468_v21, %v469_v55  ;;  %v396_v3 = vmax.f32 %v394_v44, %v395_v47  ;;  %v435_v6 = vrot.slane %v1249_v36, 4 }
  0xc8   : > { %v1258_v7 = vmul.f32 %v1249_v36, %v1249_v36  ;;  %v492_v26 = vmin.f32 %v490_v25, %v491_v38  ;;  %v628_v10 = vadd.f32 %v627_v61, %v1192_v43  ;;  %v666_v16 = vadd.f32 %v665_v4, %v1207_v56  ;;  %v347_v56 = vpop.f32.mrf.mxu3 }
  0xc9   : > { %v567_v14 = vsel %vm566_vm5, %v374_v59, %v565_v62  ;;  %v603_v9 = vsel %vm566_vm5, %v470_v60, %v602_v8  ;;  %v397_v33 = vrot.slane %v396_v3, 1  ;;  %v436_v62 = vmax.f32 %v1249_v36, %v435_v6 }
  0xca   : > { %v1265_v46 = vsel %vm568_vm6, %v1153_v49, %v567_v14  ;;  %v1269_v57 = vsel %vm568_vm6, %v1155_v50, %v603_v9  ;;  %v493_v17 = vrot.slane %v492_v26, 1  ;;  %v629_v18 = vadd.f32 %v628_v10, %v327_v5 }
  0xcb   : > { %v532_v8 = vmin.f32 %v1249_v36, %v435_v6  ;;  %v1274_v19 = vmax.f32 %v396_v3, %v397_v33  ;;  %v667_v43 = vadd.f32 %v666_v16, %v652_v30  ;;  %v417_v20 = vrot.slane %v337_v15, 4 }
  0xcc   : > { %v577_v49 = vsel %vm564_vm4, %v416_v58, %v1221_v27  ;;  %v1278_v21 = vmin.f32 %v492_v26, %v493_v17  ;;  %v630_v50 = vadd.f32 %v629_v18, %v1133_v31  ;;  %v437_v22 = vrot.slane %v436_v62, 2 }
  0xcd   : > { %v533_v41 = vrot.slane %v532_v8, 2  ;;  %v668_v5 = vadd.f32 %v667_v43, %v1140_v34  ;;  %v418_v35 = vmax.f32 %v337_v15, %v417_v20  ;;  %v514_v42 = vmin.f32 %v337_v15, %v417_v20 }
  0xce   : > { %v609_v44 = vsel %vm564_vm4, %v512_v13, %v1224_v28  ;;  %v438_v51 = vmax.f32 %v436_v62, %v437_v22  ;;  %v631_v55 = vadd.f32 %v630_v50, %v1168_v11  ;;  %v656_v45 = vmul.f32 %v337_v15, %v337_v15  ;;  %v212_v11 = vld [vmem:[%s1394_s2] sm:$0x1] }
  0xcf   : > { %v534_v30 = vmin.f32 %v532_v8, %v533_v41  ;;  %v419_v27 = vrot.slane %v418_v35, 2  ;;  %v515_v25 = vrot.slane %v514_v42, 2  ;;  %v669_v58 = vadd.f32 %v668_v5, %v1173_v24 }
  0xd0   : > { %v441_v31 = vrot.slane %v347_v56, 4  ;;  %v439_v63 = vrot.slane %v438_v51, 1  ;;  %v632_v59 = vadd.f32 %v631_v55, %v1218_v23  ;;  %v660_v34 = vmul.f32 %v347_v56, %v347_v56 }
  0xd1   : > { %v535_v47 = vrot.slane %v534_v30, 1  ;;  %v420_v60 = vmax.f32 %v418_v35, %v419_v27  ;;  %v516_v38 = vmin.f32 %v514_v42, %v515_v25  ;;  %v670_v61 = vadd.f32 %v669_v58, %v1233_v12 }
  0xd2   : > { %v442_v28 = vmax.f32 %v347_v56, %v441_v31  ;;  %v440_v13 = vmax.f32 %v438_v51, %v439_v63  ;;  %v633_v4 = vadd.f32 %v632_v59, %v337_v15  ;;  %v538_v24 = vmin.f32 %v347_v56, %v441_v31 }
  0xd3   : > { %v536_v3 = vmin.f32 %v534_v30, %v535_v47  ;;  %v421_v6 = vrot.slane %v420_v60, 1  ;;  %v517_v14 = vrot.slane %v516_v38, 1  ;;  %v671_v9 = vadd.f32 %v670_v61, %v656_v45 }
  0xd4   : > { %v443_v26 = vrot.slane %v442_v28, 2  ;;  %v634_v23 = vadd.f32 %v633_v4, %v1135_v32  ;;  %v539_v10 = vrot.slane %v538_v24, 2  ;;  %vm350_vm7 = vcmp.ge.f32.partialorder %v212_v11, 0.0 }
  0xd5   : > { %v422_v12 = vmax.f32 %v420_v60, %v421_v6  ;;  %v518_v33 = vmin.f32 %v516_v38, %v517_v14  ;;  %v672_v16 = vadd.f32 %v671_v9, %v1145_v37  ;;  %v1032_v15 = vmov 0  }
  0xd6   : > { %v444_v17 = vmax.f32 %v442_v28, %v443_v26  ;;  %v540_v18 = vmin.f32 %v538_v24, %v539_v10  ;;  %v635_v62 = vadd.f32 %v634_v23, %v1199_v52  ;;  %v543_v8 = vsel %vm350_vm7, 1, %v1032_v15 }
  0xd7   : > { %v578_v43 = vsel %vm566_vm5, %v422_v12, %v577_v49  ;;  %v610_v32 = vsel %vm566_vm5, %v518_v33, %v609_v44  ;;  %v673_v50 = vadd.f32 %v672_v16, %v1214_v2  ;;  %v544_v49 = vperm.slane %v543_v8, 0 }
  0xd8   : > { %v445_v20 = vrot.slane %v444_v17, 1  ;;  %v579_v37 = vsel %vm568_vm6, %v1177_v29, %v578_v43  ;;  %v611_v52 = vsel %vm568_vm6, %v1201_v53, %v610_v32  ;;  %v541_v22 = vrot.slane %v540_v18, 1 }
  0xd9   : > { %v636_v41 = vadd.f32 %v635_v62, %v1249_v36  ;;  %v674_v35 = vadd.f32 %v673_v50, %v1258_v7  ;;  %v571_v42 = vsel %vm570_vm8, %v1187_v39, %v1265_v46  ;;  %vm1316_vm11 = vcmp.eq.s32.totalorder %v544_v49, 1 }
  0xda   : > { %v446_v5 = vmax.f32 %v444_v17, %v445_v20  ;;  %v542_v2 = vmin.f32 %v540_v18, %v541_v22  ;;  %v573_v36 = vsel %vm572_vm9, %v1226_v48, %v571_v42  ;;  %v580_v39 = vsel %vm570_vm8, %v1239_v0, %v579_v37 }
  0xdb   : > { %v637_v44 = vadd.f32 %v636_v41, %v347_v56  ;;  %v675_v29 = vadd.f32 %v674_v35, %v660_v34  ;;  %v575_v46 = vsel %vm574_vm10, %v1274_v19, %v573_v36  ;;  %v581_v56 = vsel %vm572_vm9, %v440_v13, %v580_v39 }
  0xdc   : > { %v605_v51 = vsel %vm570_vm8, %v1189_v40, %v1269_v57  ;;  %v582_v55 = vsel %vm574_vm10, %v446_v5, %v581_v56  ;;  %v612_v48 = vsel %vm570_vm8, %v1241_v1, %v611_v52 }
  0xdd   : > { %v638_v7 = vrot.slane %v637_v44, 4  ;;  %v676_v30 = vrot.slane %v675_v29, 4  ;;  %v606_v45 = vsel %vm572_vm9, %v1228_v54, %v605_v51  ;;  %v613_v40 = vsel %vm572_vm9, %v536_v3, %v612_v48 }
  0xde   : > { %v607_v19 = vsel %vm574_vm10, %v1278_v21, %v606_v45  ;;  %v614_v27 = vsel %vm574_vm10, %v542_v2, %v613_v40 }
  0xdf   : > { %v639_v0 = vadd.f32 %v638_v7, %v637_v44  ;;  %v677_v57 = vadd.f32 %v676_v30, %v675_v29  ;;  %v617_v54 = vsel %vm1316_vm11, %v575_v46, %v607_v19  ;;  %v618_v1 = vsel %vm1316_vm11, %v582_v55, %v614_v27 }
  0xe0   : > { %v882_v31 = vpack.c.bf16 %v618_v1, %v617_v54 }
  0xe1   : > { %v640_v25 = vrot.slane %v639_v0, 2  ;;  %v678_v58 = vrot.slane %v677_v57, 2 }
  0xe2   : > { %883 = vst [vmem:[%s195_s22] sm:$0xff] %v882_v31  }
  0xe3   : > { %v641_v63 = vadd.f32 %v640_v25, %v639_v0  ;;  %v679_v21 = vadd.f32 %v678_v58, %v677_v57 }
  0xe4   : > { %962 = shalt.err (!%p959_p3)
}
  0xe5   : > { %s1033_s11 = smov 64   ;;  %s1034_s20 = smov 4   ;;  %v642_v47 = vrot.slane %v641_v63, 1  ;;  %v680_v59 = vrot.slane %v679_v21, 1 }
  0xe6   : > { %887 = dma.vmem_to_hbm [thread:$0]  (%p1098_p5), %s704_s23, 128, %s706_s27, %s686_s5, %s1033_s11, %s1033_s11, %s1034_s20  }
  0xe7   : > { %s202_s22 = scalar_lea.vmem [#allocation4], %s819_s12  ;;  %s722_s29 = sshll.u32 %s718_s30, 4  ;;  %v643_v34 = vadd.f32 %v642_v47, %v641_v63  ;;  %v681_v60 = vadd.f32 %v680_v59, %v679_v21  ;;  %s723_s29 = int_to_ptr.hbm [resolvable:$true] %s722_s29 }
  0xe8   : > { %s720_s28 = sshll.u32 %s202_s22, 4  ;;  %s691_s6 = scalar_lea.sflag [#allocation5], %s1295_s10  ;;  %s721_s28 = int_to_ptr.vmem [resolvable:$true] %s720_s28 }
  0xe9   : > { %v683_v38 = vsel %vm295_vm1, %v643_v34, %v681_v60  ;;  %s977_s7 = sshra.s32 %s723_s29, 4  ;;  %s983_s12 = scalar_lea.hbm %s1396_s4, 16  ;;  %s978_s7 = int_to_ptr.hbm [resolvable:$true] %s977_s7 }
  0xea   : > { %684 = vst [vmem:[%s202_s22] sm:$0xff] %v683_v38  ;;  %s979_s8 = scalar_lea.hbm %s978_s7, 8  ;;  %p984_p9 = scmp.lt.s32.totalorder %s978_s7, %s1396_s4 }
  0xeb   : > { %p980_p4 = scmp.ne.s32.totalorder %s978_s7, %s979_s8  ;;  %p985_p10 = scmp.lt.s32.totalorder %s983_s12, %s979_s8 }
  0xed   : > { %p981_p7 = pnand %p980_p4, %p1098_p5  ;;  %p986_p11 = por %p985_p10, %p984_p9 }
  0xef   : > { %p982_p8 = pneg %p981_p7 }
  0xf1   : > { %p987_p12 = pnand %p986_p11, %p982_p8 }
  0xf3   : > { %990 = shalt.err (!%p987_p12)
}
  0xf4   : > { %888 = dma.vmem_to_hbm [thread:$0]  (%p1098_p5), %s721_s28, 128, %s723_s29, %s691_s6  }
  0xf5 PF: > { %p898_p13 = scmp.ge.s32.totalorder %s1029_s18, 2  ;;  %s734_s10 = sand.u32 1, %s1017_s15  }
  0xf6   : > { %s735_s9 = scalar_lea.sflag [#allocation3], %s734_s10 }
  0xf7   : > { %p892_p0 = pnand %p898_p13, %p1102_p6 }
  0xf9   : > { %p893_p1 = pneg %p892_p0 }
  0xfb   : > { %1008 = dma.done.wait (%p893_p1), %s735_s9, 128  }
  0xfc   : > { %1010 = vsyncadd (%p893_p1), %s735_s9, 4294967168  ;;  %s745_s13 = scalar_lea.sflag [#allocation5], %s734_s10 }
  0xfd   : > { %1012 = dma.done.wait (%p893_p1), %s745_s13, 128  }
  0xfe   : > { %1014 = vsyncadd (%p893_p1), %s745_s13, 4294967168  ;;  %p18_p5 = scmp.ge.s32.totalorder %s1085_s21, 4   ;;  %s1401_s15 = smov %s1021_s16 }
  0xff   : > { %s1402_s16 = smov %s1025_s17  ;;  %s1403_s17 = smov %s1096_s24 }
 0x100   : > { %s1404_s18 = smov %s1085_s21  ;;  %20 = sbr.rel (!%p18_p5) target bundleno = 5 (0x5), region = 84 }
 0x105   :  { %751 = vsyncpa [#allocation3], 1 }
 0x106   :  { %753 = vsyncpa [#allocation3 + $0x1], 1 }
 0x107   :  { %754 = vsyncpa [#allocation5], 1 }
 0x108   :  { %756 = vsyncpa [#allocation5 + $0x1], 1 }

</bundles_post_ra>
